<compile_context>
chip_gen: v7x
topology: tpu7x:2x2x1
jax: 0.10.0
libtpu: 0.0.40
codegen_flags: <defaults>
</compile_context>

<pallas_src>
import jax
import jax.numpy as jnp
from jax.experimental import pallas as pl
from jax.experimental.pallas import tpu as pltpu


def _halo(W):
    # Lane-aligned halo on each side of the flattened (C, H*W) image; must cover W+1.
    return ((W + 1 + 127) // 128) * 128


def _rup8(c):
    return ((c + 7) // 8) * 8


def _make_up_kernel(H, W, Nb, C1, C2, CINP, CM, CO):
    P = H * W
    HALO = _halo(W)

    def build_slab(pad_ref, left_ok, right_ok):
        """im2col slab (9*C, P) for a 3x3 / pad=1 conv from a zero-haloed (C, P+2*HALO)
        scratch; static lane-offset windows, row-wrap fixed by the left/right masks."""
        taps = []
        for dy in range(3):
            for dx in range(3):
                o = (dy - 1) * W + (dx - 1)              # flat offset of tap (dy, dx)
                t = pad_ref[:, HALO + o:HALO + o + P]    # value at flat index p + o
                if dx == 0:
                    t = t * left_ok                      # x == 0 has no left neighbour
                elif dx == 2:
                    t = t * right_ok                     # x == W-1 has no right neighbour
                taps.append(t)
        return jnp.concatenate(taps, axis=0)             # (9*C, P), rows = (dy, dx, ci)

    def kernel(x1_ref, x2_ref, up_ref, w1_ref, b1_ref, w2_ref, b2_ref,
               o_ref, pad1_ref, pad2_ref):
        # x1_ref: (Nb, C1, H1*W1) f32     x2_ref: (Nb, C2, P) f32
        # up_ref: (H1*W1, P) bf16         w1_ref: (CM, 9*CINP) bf16 (BN scale folded)
        # w2_ref: (CO, 9*CM) bf16         b1/b2: (CM,1)/(CO,1) f32
        # o_ref : (Nb, CO, P) f32         pad*_ref: VMEM f32 scratch (C, P + 2*HALO)
        x_idx = jax.lax.broadcasted_iota(jnp.int32, (1, P), 1) % W
        left_ok = (x_idx >= 1).astype(jnp.float32)
        right_ok = (x_idx <= W - 2).astype(jnp.float32)

        # Hoist constant-operand loads/casts out of the per-image loop.
        upm = up_ref[...].astype(jnp.float32)
        w1m = w1_ref[...].astype(jnp.float32)
        w2m = w2_ref[...].astype(jnp.float32)
        b1v = b1_ref[...]
        b2v = b2_ref[...]

        # Zero only the halo strips (interior is fully overwritten per image below).
        pad1_ref[:, :HALO] = jnp.zeros((CINP, HALO), pad1_ref.dtype)
        pad1_ref[:, HALO + P:] = jnp.zeros((CINP, HALO), pad1_ref.dtype)
        pad2_ref[:, :HALO] = jnp.zeros((CM, HALO), pad2_ref.dtype)
        pad2_ref[:, HALO + P:] = jnp.zeros((CM, HALO), pad2_ref.dtype)
        if CINP > C1 + C2:   # zero padded input-channel rows once (never dirtied)
            pad1_ref[C1 + C2:, HALO:HALO + P] = jnp.zeros((CINP - C1 - C2, P),
                                                          pad1_ref.dtype)

        for b in range(Nb):
            # Bilinear 2x upsample (align_corners=True) + zero pad: one MXU matmul.
            x1u = jnp.dot(x1_ref[b], upm, preferred_element_type=jnp.float32)

            # Fused channel concat: write x2 and upsampled x1 straight into the
            # conv-1 halo buffer interior (no (Cin, P) intermediate).
            pad1_ref[:C2, HALO:HALO + P] = x2_ref[b]
            pad1_ref[C2:C2 + C1, HALO:HALO + P] = x1u

            # Layer 1: conv3x3 (BN scale pre-folded) -> +bias -> ReLU
            slab1 = build_slab(pad1_ref, left_ok, right_ok)          # (9*CINP, P)
            y1 = jnp.dot(w1m, slab1, preferred_element_type=jnp.float32)
            y1 = jnp.maximum(y1 + b1v, 0.0)                          # (CM, P)

            # Layer 2: conv3x3 -> +bias -> ReLU
            pad2_ref[:, HALO:HALO + P] = y1
            slab2 = build_slab(pad2_ref, left_ok, right_ok)          # (9*CM, P)
            y2 = jnp.dot(w2m, slab2, preferred_element_type=jnp.float32)
            y2 = jnp.maximum(y2 + b2v, 0.0)                          # (CO, P)

            o_ref[b] = y2.astype(o_ref.dtype)                        # full-sublane store

    return kernel


# ----------------------------------------------------------------------------
# Wrapper: builds the upsample matrix / folded+padded weights and calls the kernel.
# ----------------------------------------------------------------------------
def _interp_rows(n_in, n_out, pad_before, pad_after):
    """(pad_before + n_out + pad_after, n_in) matrix: align_corners=True linear
    resize n_in -> n_out, with zero rows for the padded output positions."""
    if n_in == 1:
        core = jnp.ones((n_out, 1), jnp.float32)
    else:
        s = jnp.arange(n_out, dtype=jnp.float32) * (n_in - 1) / (n_out - 1)
        i0 = jnp.clip(jnp.floor(s), 0, n_in - 2).astype(jnp.int32)
        a = s - i0.astype(jnp.float32)
        core = (jax.nn.one_hot(i0, n_in, dtype=jnp.float32) * (1.0 - a)[:, None]
                + jax.nn.one_hot(i0 + 1, n_in, dtype=jnp.float32) * a[:, None])
    return jnp.pad(core, ((pad_before, pad_after), (0, 0)))


def fold_bn(gamma, beta, mean, var, eps=1e-5):
    scale = gamma / jnp.sqrt(var + eps)
    bias = beta - mean * scale
    return scale[:, None], bias[:, None]       # (C, 1): broadcasts over the lane axis


def up_forward(x1, x2, params):
    """x1: (N, C1, H1, W1), x2: (N, C2, H, W), NCHW. Returns NCHW (N, Cout, H, W)."""
    N, C1, H1, W1 = x1.shape
    _, C2, H, W = x2.shape
    P1, P = H1 * W1, H * W
    Cin = C1 + C2

    w1, w2 = params["w1"], params["w2"]        # (Cmid, Cin, 3, 3), (Cout, Cmid, 3, 3)
    Cmid, Cout = w1.shape[0], w2.shape[0]
    s1, b1 = params["s1"], params["b1"]
    s2, b2 = params["s2"], params["b2"]

    # Channel padding to full 8-sublane tiles.
    CINP, CM, CO = _rup8(Cin), _rup8(Cmid), _rup8(Cout)

    # Fold the BN scale into the conv weights (bias + ReLU stay in-kernel).
    w1f = w1 * s1.reshape(Cmid, 1, 1, 1)
    w2f = w2 * s2.reshape(Cout, 1, 1, 1)
    w1p = jnp.pad(w1f, ((0, CM - Cmid), (0, CINP - Cin), (0, 0), (0, 0)))
    w2p = jnp.pad(w2f, ((0, CO - Cout), (0, CM - Cmid), (0, 0), (0, 0)))
    b1p = jnp.pad(b1, ((0, CM - Cmid), (0, 0))).astype(jnp.float32)
    b2p = jnp.pad(b2, ((0, CO - Cout), (0, 0))).astype(jnp.float32)

    # Conv weights -> (Cout, 9*Cin) bf16, columns ordered (dy, dx, cin) = im2col slab rows.
    w1_r = jnp.transpose(w1p, (0, 2, 3, 1)).reshape(CM, 9 * CINP).astype(jnp.bfloat16)
    w2_r = jnp.transpose(w2p, (0, 2, 3, 1)).reshape(CO, 9 * CM).astype(jnp.bfloat16)

    # Upsample(scale=2, bilinear, align_corners=True) + F.pad as one (P1, P) map, bf16.
    diffY, diffX = H - 2 * H1, W - 2 * W1
    Uh = _interp_rows(H1, 2 * H1, diffY // 2, diffY - diffY // 2)   # (H, H1)
    Uw = _interp_rows(W1, 2 * W1, diffX // 2, diffX - diffX // 2)   # (W, W1)
    up_mat = jnp.einsum("yi,xj->ijyx", Uh, Uw).reshape(P1, P).astype(jnp.bfloat16)

    # Lane-dense flattening (trailing-dim reshapes only; no transposes).
    x1f = x1.reshape(N, C1, P1).astype(jnp.float32)
    x2f = x2.reshape(N, C2, P).astype(jnp.float32)

    # Batch blocking: Nb images per grid step. Two steps keep both v7x TCs busy
    # ("parallel" axis); the extra ~0.35us step on single-TC v5e/v6e is negligible.
    G = 2 if (N >= 2 and N % 2 == 0) else 1
    Nb = N // G

    halo = _halo(W)
    out = pl.pallas_call(
        _make_up_kernel(H, W, Nb, C1, C2, CINP, CM, CO),
        out_shape=jax.ShapeDtypeStruct((N, CO, P), jnp.float32),
        grid=(G,),
        in_specs=[
            pl.BlockSpec((Nb, C1, P1), lambda g: (g, 0, 0)),
            pl.BlockSpec((Nb, C2, P), lambda g: (g, 0, 0)),
            pl.BlockSpec((P1, P), lambda g: (0, 0)),
            pl.BlockSpec((CM, 9 * CINP), lambda g: (0, 0)),
            pl.BlockSpec((CM, 1), lambda g: (0, 0)),
            pl.BlockSpec((CO, 9 * CM), lambda g: (0, 0)),
            pl.BlockSpec((CO, 1), lambda g: (0, 0)),
        ],
        out_specs=pl.BlockSpec((Nb, CO, P), lambda g: (g, 0, 0)),
        scratch_shapes=[
            pltpu.VMEM((CINP, P + 2 * halo), jnp.float32),
            pltpu.VMEM((CM, P + 2 * halo), jnp.float32),
        ],
        compiler_params=pltpu.CompilerParams(
            dimension_semantics=("parallel",)),   # v7x: steps shard across both TCs
    )(x1f, x2f, up_mat, w1_r, b1p, w2_r, b2p)
    return out[:, :Cout, :].reshape(N, Cout, H, W)


# ----------------------------------------------------------------------------
# Pure-JAX reference (matches PyTorch eval semantics) for a runtime sanity check.
# ----------------------------------------------------------------------------
def _reference_up(x1, x2, params):
    def upsample2x(x):
        N, C, H, W = x.shape
        Ho, Wo = 2 * H, 2 * W
        sh = jnp.arange(Ho, dtype=jnp.float32) * (H - 1) / (Ho - 1)
        sw = jnp.arange(Wo, dtype=jnp.float32) * (W - 1) / (Wo - 1)
        h0 = jnp.clip(jnp.floor(sh), 0, max(H - 2, 0)).astype(jnp.int32)
        w0 = jnp.clip(jnp.floor(sw), 0, max(W - 2, 0)).astype(jnp.int32)
        h1 = jnp.minimum(h0 + 1, H - 1)
        w1 = jnp.minimum(w0 + 1, W - 1)
        ah = sh - h0.astype(jnp.float32)
        aw = sw - w0.astype(jnp.float32)
        top = (x[:, :, h0, :] * (1 - ah)[None, None, :, None]
               + x[:, :, h1, :] * ah[None, None, :, None])
        return top[:, :, :, w0] * (1 - aw) + top[:, :, :, w1] * aw

    x1u = upsample2x(x1)
    diffY = x2.shape[2] - x1u.shape[2]
    diffX = x2.shape[3] - x1u.shape[3]
    x1u = jnp.pad(x1u, ((0, 0), (0, 0),
                        (diffY // 2, diffY - diffY // 2),
                        (diffX // 2, diffX - diffX // 2)))
    x = jnp.concatenate([x2, x1u], axis=1)

    def conv_bn_relu(x, w, s, b):
        y = jax.lax.conv_general_dilated(
            x, w, window_strides=(1, 1), padding=((1, 1), (1, 1)),
            dimension_numbers=("NCHW", "OIHW", "NCHW"))
        y = y * s[None, :, :, None] + b[None, :, :, None]
        return jnp.maximum(y, 0.0)

    y = conv_bn_relu(x, params["w1"], params["s1"], params["b1"])
    return conv_bn_relu(y, params["w2"], params["s2"], params["b2"])


# ----------------------------------------------------------------------------
# Deterministic parameters for Up(in_channels=8, out_channels=4, bilinear=True)
# ----------------------------------------------------------------------------
def make_params(key, in_channels, out_channels):
    mid_channels = in_channels // 2
    ks = jax.random.split(key, 10)
    # PyTorch conv weight layout: (Cout, Cin, kh, kw)
    w1 = 0.1 * jax.random.normal(ks[0], (mid_channels, in_channels, 3, 3), jnp.float32)
    w2 = 0.1 * jax.random.normal(ks[1], (out_channels, mid_channels, 3, 3), jnp.float32)
    g1 = 1.0 + 0.1 * jax.random.normal(ks[2], (mid_channels,), jnp.float32)
    be1 = 0.1 * jax.random.normal(ks[3], (mid_channels,), jnp.float32)
    m1 = 0.05 * jax.random.normal(ks[4], (mid_channels,), jnp.float32)
    v1 = 1.0 + 0.1 * jnp.abs(jax.random.normal(ks[5], (mid_channels,), jnp.float32))
    g2 = 1.0 + 0.1 * jax.random.normal(ks[6], (out_channels,), jnp.float32)
    be2 = 0.1 * jax.random.normal(ks[7], (out_channels,), jnp.float32)
    m2 = 0.05 * jax.random.normal(ks[8], (out_channels,), jnp.float32)
    v2 = 1.0 + 0.1 * jnp.abs(jax.random.normal(ks[9], (out_channels,), jnp.float32))
    s1, b1 = fold_bn(g1, be1, m1, v1)
    s2, b2 = fold_bn(g2, be2, m2, v2)
    return {"w1": w1, "s1": s1, "b1": b1, "w2": w2, "s2": s2, "b2": b2}


if __name__ == "__main__":
    key = jax.random.PRNGKey(0)
    k1, k2, kp = jax.random.split(key, 3)

    # Standard UNet Up: x1 (low-res, upsampled) and x2 (skip connection).
    # in_channels = C(x1) + C(x2) = 8, out_channels = 4.
    x1 = jax.random.normal(k1, (2, 4, 8, 8), jnp.float32)      # NCHW
    x2 = jax.random.normal(k2, (2, 4, 16, 16), jnp.float32)    # NCHW

    params = make_params(kp, in_channels=8, out_channels=4)

    out = jax.jit(up_forward)(x1, x2, params)
    out = jax.block_until_ready(out)

    assert out.shape == (2, 4, 16, 16), out.shape
    assert bool(jnp.all(jnp.isfinite(out)))

    ref = jax.block_until_ready(jax.jit(_reference_up)(x1, x2, params))
    # bf16 MXU operand passes (kernel and reference alike) => bf16-level tolerance.
    assert jnp.allclose(out, ref, atol=5e-3, rtol=5e-3), \
        float(jnp.max(jnp.abs(out - ref)))

    print("KERNEL_OK")
</pallas_src>

<mosaic_0001>
module attributes {stable_mosaic.version = 11 : i64} {
  func.func @kernel(%arg0: i32, %arg1: memref<1x4x64xf32, #tpu.memory_space<vmem>>, %arg2: memref<1x4x256xf32, #tpu.memory_space<vmem>>, %arg3: memref<64x256xbf16, #tpu.memory_space<vmem>>, %arg4: memref<8x72xbf16, #tpu.memory_space<vmem>>, %arg5: memref<8x1xf32, #tpu.memory_space<vmem>>, %arg6: memref<8x72xbf16, #tpu.memory_space<vmem>>, %arg7: memref<8x1xf32, #tpu.memory_space<vmem>>, %arg8: memref<1x8x256xf32, #tpu.memory_space<vmem>>, %arg9: memref<8x512xf32, #tpu.memory_space<vmem>>, %arg10: memref<8x512xf32, #tpu.memory_space<vmem>>) attributes {dimension_semantics = [#tpu.dimension_semantics<parallel>], iteration_bounds = array<i64: 2>, scalar_prefetch = 0 : i64, scratch_operands = 2 : i64, tpu.core_type = #tpu.core_type<tc>, window_params = [{transform_indices = @transform_0, window_bounds = array<i64: 1, 4, 64>}, {transform_indices = @transform_1, window_bounds = array<i64: 1, 4, 256>}, {pipeline_mode = #tpu.pipeline_mode<synchronous>, transform_indices = @transform_2, window_bounds = array<i64: 64, 256>}, {pipeline_mode = #tpu.pipeline_mode<synchronous>, transform_indices = @transform_3, window_bounds = array<i64: 8, 72>}, {pipeline_mode = #tpu.pipeline_mode<synchronous>, transform_indices = @transform_4, window_bounds = array<i64: 8, 1>}, {pipeline_mode = #tpu.pipeline_mode<synchronous>, transform_indices = @transform_5, window_bounds = array<i64: 8, 72>}, {pipeline_mode = #tpu.pipeline_mode<synchronous>, transform_indices = @transform_6, window_bounds = array<i64: 8, 1>}, {transform_indices = @transform_7, window_bounds = array<i64: 1, 8, 256>}]} {
    %0 = tpu.iota {dimensions = array<i32: 1>} : vector<1x256xi32>
    %c16_i32 = arith.constant 16 : i32
    %c0_i32 = arith.constant 0 : i32
    %1 = arith.cmpi eq, %c16_i32, %c0_i32 : i32
    %c1_i32 = arith.constant 1 : i32
    %2 = arith.select %1, %c1_i32, %c16_i32 : i32
    %3 = vector.broadcast %2 : i32 to vector<1x256xi32>
    %4 = arith.remsi %0, %3 : vector<1x256xi32>
    %c0_i32_0 = arith.constant 0 : i32
    %5 = vector.broadcast %c0_i32_0 : i32 to vector<1x256xi32>
    %6 = arith.cmpi ne, %4, %5 : vector<1x256xi32>
    %c0_i32_1 = arith.constant 0 : i32
    %7 = vector.broadcast %c0_i32_1 : i32 to vector<1x256xi32>
    %8 = arith.cmpi slt, %4, %7 : vector<1x256xi32>
    %c0_i32_2 = arith.constant 0 : i32
    %9 = arith.cmpi slt, %2, %c0_i32_2 : i32
    %10 = vector.broadcast %9 : i1 to vector<1x256xi1>
    %11 = vector.broadcast %10 : vector<1x256xi1> to vector<1x256xi1>
    %12 = arith.xori %8, %11 : vector<1x256xi1>
    %13 = arith.andi %12, %6 : vector<1x256xi1>
    %14 = vector.broadcast %2 : i32 to vector<1x256xi32>
    %15 = arith.addi %4, %14 : vector<1x256xi32>
    %16 = arith.select %13, %15, %4 : vector<1x256xi1>, vector<1x256xi32>
    %c1_i32_3 = arith.constant 1 : i32
    %17 = vector.broadcast %c1_i32_3 : i32 to vector<1x256xi32>
    %18 = arith.cmpi sge, %16, %17 : vector<1x256xi32>
    %19 = arith.extui %18 : vector<1x256xi1> to vector<1x256xi32>
    %20 = arith.sitofp %19 : vector<1x256xi32> to vector<1x256xf32>
    %c14_i32 = arith.constant 14 : i32
    %21 = vector.broadcast %c14_i32 : i32 to vector<1x256xi32>
    %22 = arith.cmpi sle, %16, %21 : vector<1x256xi32>
    %23 = arith.extui %22 : vector<1x256xi1> to vector<1x256xi32>
    %24 = arith.sitofp %23 : vector<1x256xi32> to vector<1x256xf32>
    %c0 = arith.constant 0 : index
    %c0_4 = arith.constant 0 : index
    %25 = vector.load %arg3[%c0, %c0_4] : memref<64x256xbf16, #tpu.memory_space<vmem>>, vector<64x256xbf16>
    %26 = arith.extf %25 : vector<64x256xbf16> to vector<64x256xf32>
    %c0_5 = arith.constant 0 : index
    %c0_6 = arith.constant 0 : index
    %27 = vector.load %arg4[%c0_5, %c0_6] : memref<8x72xbf16, #tpu.memory_space<vmem>>, vector<8x72xbf16>
    %28 = arith.extf %27 : vector<8x72xbf16> to vector<8x72xf32>
    %c0_7 = arith.constant 0 : index
    %c0_8 = arith.constant 0 : index
    %29 = vector.load %arg6[%c0_7, %c0_8] : memref<8x72xbf16, #tpu.memory_space<vmem>>, vector<8x72xbf16>
    %30 = arith.extf %29 : vector<8x72xbf16> to vector<8x72xf32>
    %c0_9 = arith.constant 0 : index
    %c0_10 = arith.constant 0 : index
    %31 = vector.load %arg5[%c0_9, %c0_10] : memref<8x1xf32, #tpu.memory_space<vmem>>, vector<8x1xf32>
    %c0_11 = arith.constant 0 : index
    %c0_12 = arith.constant 0 : index
    %32 = vector.load %arg7[%c0_11, %c0_12] : memref<8x1xf32, #tpu.memory_space<vmem>>, vector<8x1xf32>
    %cst = arith.constant 0.000000e+00 : f32
    %33 = vector.broadcast %cst : f32 to vector<8x128xf32>
    %c0_13 = arith.constant 0 : index
    %c0_14 = arith.constant 0 : index
    %34 = vector.load %arg9[%c0_13, %c0_14] : memref<8x512xf32, #tpu.memory_space<vmem>>, vector<8x128xf32>
    tpu.vector_store %arg9[%c0_13, %c0_14], %33 {strides = array<i32>} : memref<8x512xf32, #tpu.memory_space<vmem>>, vector<8x128xf32>,
    %cst_15 = arith.constant 0.000000e+00 : f32
    %35 = vector.broadcast %cst_15 : f32 to vector<8x128xf32>
    %c0_16 = arith.constant 0 : index
    %c384 = arith.constant 384 : index
    %36 = vector.load %arg9[%c0_16, %c384] : memref<8x512xf32, #tpu.memory_space<vmem>>, vector<8x128xf32>
    tpu.vector_store %arg9[%c0_16, %c384], %35 {strides = array<i32>} : memref<8x512xf32, #tpu.memory_space<vmem>>, vector<8x128xf32>,
    %cst_17 = arith.constant 0.000000e+00 : f32
    %37 = vector.broadcast %cst_17 : f32 to vector<8x128xf32>
    %c0_18 = arith.constant 0 : index
    %c0_19 = arith.constant 0 : index
    %38 = vector.load %arg10[%c0_18, %c0_19] : memref<8x512xf32, #tpu.memory_space<vmem>>, vector<8x128xf32>
    tpu.vector_store %arg10[%c0_18, %c0_19], %37 {strides = array<i32>} : memref<8x512xf32, #tpu.memory_space<vmem>>, vector<8x128xf32>,
    %cst_20 = arith.constant 0.000000e+00 : f32
    %39 = vector.broadcast %cst_20 : f32 to vector<8x128xf32>
    %c0_21 = arith.constant 0 : index
    %c384_22 = arith.constant 384 : index
    %40 = vector.load %arg10[%c0_21, %c384_22] : memref<8x512xf32, #tpu.memory_space<vmem>>, vector<8x128xf32>
    tpu.vector_store %arg10[%c0_21, %c384_22], %39 {strides = array<i32>} : memref<8x512xf32, #tpu.memory_space<vmem>>, vector<8x128xf32>,
    %c0_23 = arith.constant 0 : index
    %c0_24 = arith.constant 0 : index
    %c0_25 = arith.constant 0 : index
    %41 = vector.load %arg1[%c0_23, %c0_24, %c0_25] : memref<1x4x64xf32, #tpu.memory_space<vmem>>, vector<1x4x64xf32>
    %42 = vector.shape_cast %41 : vector<1x4x64xf32> to vector<4x64xf32>
    %cst_26 = arith.constant dense<0.000000e+00> : vector<4x256xf32>
    %43 = tpu.matmul %42, %26, %cst_26 {dimension_numbers = #tpu.dot_dimension_numbers<[1], [0], [0], [1], [0, 0, 1, 1], [], []>} : vector<4x64xf32>, vector<64x256xf32>, vector<4x256xf32> -> vector<4x256xf32>
    %c0_27 = arith.constant 0 : index
    %c0_28 = arith.constant 0 : index
    %c0_29 = arith.constant 0 : index
    %44 = vector.load %arg2[%c0_27, %c0_28, %c0_29] : memref<1x4x256xf32, #tpu.memory_space<vmem>>, vector<1x4x256xf32>
    %45 = vector.shape_cast %44 : vector<1x4x256xf32> to vector<4x256xf32>
    %c0_30 = arith.constant 0 : index
    %c128 = arith.constant 128 : index
    %46 = vector.load %arg9[%c0_30, %c128] : memref<8x512xf32, #tpu.memory_space<vmem>>, vector<4x256xf32>
    tpu.vector_store %arg9[%c0_30, %c128], %45 {strides = array<i32>} : memref<8x512xf32, #tpu.memory_space<vmem>>, vector<4x256xf32>,
    %c4 = arith.constant 4 : index
    %c128_31 = arith.constant 128 : index
    %47 = vector.load %arg9[%c4, %c128_31] : memref<8x512xf32, #tpu.memory_space<vmem>>, vector<4x256xf32>
    tpu.vector_store %arg9[%c4, %c128_31], %43 {strides = array<i32>} : memref<8x512xf32, #tpu.memory_space<vmem>>, vector<4x256xf32>,
    %c0_32 = arith.constant 0 : index
    %c111 = arith.constant 111 : index
    %48 = vector.load %arg9[%c0_32, %c111] : memref<8x512xf32, #tpu.memory_space<vmem>>, vector<8x256xf32>
    %49 = vector.broadcast %20 : vector<1x256xf32> to vector<8x256xf32>
    %50 = arith.mulf %48, %49 : vector<8x256xf32>
    %c0_33 = arith.constant 0 : index
    %c112 = arith.constant 112 : index
    %51 = vector.load %arg9[%c0_33, %c112] : memref<8x512xf32, #tpu.memory_space<vmem>>, vector<8x256xf32>
    %c0_34 = arith.constant 0 : index
    %c113 = arith.constant 113 : index
    %52 = vector.load %arg9[%c0_34, %c113] : memref<8x512xf32, #tpu.memory_space<vmem>>, vector<8x256xf32>
    %53 = vector.broadcast %24 : vector<1x256xf32> to vector<8x256xf32>
    %54 = arith.mulf %52, %53 : vector<8x256xf32>
    %c0_35 = arith.constant 0 : index
    %c127 = arith.constant 127 : index
    %55 = vector.load %arg9[%c0_35, %c127] : memref<8x512xf32, #tpu.memory_space<vmem>>, vector<8x256xf32>
    %56 = vector.broadcast %20 : vector<1x256xf32> to vector<8x256xf32>
    %57 = arith.mulf %55, %56 : vector<8x256xf32>
    %c0_36 = arith.constant 0 : index
    %c128_37 = arith.constant 128 : index
    %58 = vector.load %arg9[%c0_36, %c128_37] : memref<8x512xf32, #tpu.memory_space<vmem>>, vector<8x256xf32>
    %c0_38 = arith.constant 0 : index
    %c129 = arith.constant 129 : index
    %59 = vector.load %arg9[%c0_38, %c129] : memref<8x512xf32, #tpu.memory_space<vmem>>, vector<8x256xf32>
    %60 = vector.broadcast %24 : vector<1x256xf32> to vector<8x256xf32>
    %61 = arith.mulf %59, %60 : vector<8x256xf32>
    %c0_39 = arith.constant 0 : index
    %c143 = arith.constant 143 : index
    %62 = vector.load %arg9[%c0_39, %c143] : memref<8x512xf32, #tpu.memory_space<vmem>>, vector<8x256xf32>
    %63 = vector.broadcast %20 : vector<1x256xf32> to vector<8x256xf32>
    %64 = arith.mulf %62, %63 : vector<8x256xf32>
    %c0_40 = arith.constant 0 : index
    %c144 = arith.constant 144 : index
    %65 = vector.load %arg9[%c0_40, %c144] : memref<8x512xf32, #tpu.memory_space<vmem>>, vector<8x256xf32>
    %c0_41 = arith.constant 0 : index
    %c145 = arith.constant 145 : index
    %66 = vector.load %arg9[%c0_41, %c145] : memref<8x512xf32, #tpu.memory_space<vmem>>, vector<8x256xf32>
    %67 = vector.broadcast %24 : vector<1x256xf32> to vector<8x256xf32>
    %68 = arith.mulf %66, %67 : vector<8x256xf32>
    %69 = tpu.concatenate %50, %51, %54, %57, %58, %61, %64, %65, %68 in 0 : vector<8x256xf32>, vector<8x256xf32>, vector<8x256xf32>, vector<8x256xf32>, vector<8x256xf32>, vector<8x256xf32>, vector<8x256xf32>, vector<8x256xf32>, vector<8x256xf32> -> vector<72x256xf32>
    %cst_42 = arith.constant dense<0.000000e+00> : vector<8x256xf32>
    %70 = tpu.matmul %28, %69, %cst_42 {dimension_numbers = #tpu.dot_dimension_numbers<[1], [0], [0], [1], [0, 0, 1, 1], [], []>} : vector<8x72xf32>, vector<72x256xf32>, vector<8x256xf32> -> vector<8x256xf32>
    %71 = vector.broadcast %31 : vector<8x1xf32> to vector<8x256xf32>
    %72 = arith.addf %70, %71 : vector<8x256xf32>
    %cst_43 = arith.constant 0.000000e+00 : f32
    %73 = vector.broadcast %cst_43 : f32 to vector<8x256xf32>
    %74 = arith.maximumf %72, %73 : vector<8x256xf32>
    %c0_44 = arith.constant 0 : index
    %c128_45 = arith.constant 128 : index
    %75 = vector.load %arg10[%c0_44, %c128_45] : memref<8x512xf32, #tpu.memory_space<vmem>>, vector<8x256xf32>
    tpu.vector_store %arg10[%c0_44, %c128_45], %74 {strides = array<i32>} : memref<8x512xf32, #tpu.memory_space<vmem>>, vector<8x256xf32>,
    %c0_46 = arith.constant 0 : index
    %c111_47 = arith.constant 111 : index
    %76 = vector.load %arg10[%c0_46, %c111_47] : memref<8x512xf32, #tpu.memory_space<vmem>>, vector<8x256xf32>
    %77 = vector.broadcast %20 : vector<1x256xf32> to vector<8x256xf32>
    %78 = arith.mulf %76, %77 : vector<8x256xf32>
    %c0_48 = arith.constant 0 : index
    %c112_49 = arith.constant 112 : index
    %79 = vector.load %arg10[%c0_48, %c112_49] : memref<8x512xf32, #tpu.memory_space<vmem>>, vector<8x256xf32>
    %c0_50 = arith.constant 0 : index
    %c113_51 = arith.constant 113 : index
    %80 = vector.load %arg10[%c0_50, %c113_51] : memref<8x512xf32, #tpu.memory_space<vmem>>, vector<8x256xf32>
    %81 = vector.broadcast %24 : vector<1x256xf32> to vector<8x256xf32>
    %82 = arith.mulf %80, %81 : vector<8x256xf32>
    %c0_52 = arith.constant 0 : index
    %c127_53 = arith.constant 127 : index
    %83 = vector.load %arg10[%c0_52, %c127_53] : memref<8x512xf32, #tpu.memory_space<vmem>>, vector<8x256xf32>
    %84 = vector.broadcast %20 : vector<1x256xf32> to vector<8x256xf32>
    %85 = arith.mulf %83, %84 : vector<8x256xf32>
    %c0_54 = arith.constant 0 : index
    %c128_55 = arith.constant 128 : index
    %86 = vector.load %arg10[%c0_54, %c128_55] : memref<8x512xf32, #tpu.memory_space<vmem>>, vector<8x256xf32>
    %c0_56 = arith.constant 0 : index
    %c129_57 = arith.constant 129 : index
    %87 = vector.load %arg10[%c0_56, %c129_57] : memref<8x512xf32, #tpu.memory_space<vmem>>, vector<8x256xf32>
    %88 = vector.broadcast %24 : vector<1x256xf32> to vector<8x256xf32>
    %89 = arith.mulf %87, %88 : vector<8x256xf32>
    %c0_58 = arith.constant 0 : index
    %c143_59 = arith.constant 143 : index
    %90 = vector.load %arg10[%c0_58, %c143_59] : memref<8x512xf32, #tpu.memory_space<vmem>>, vector<8x256xf32>
    %91 = vector.broadcast %20 : vector<1x256xf32> to vector<8x256xf32>
    %92 = arith.mulf %90, %91 : vector<8x256xf32>
    %c0_60 = arith.constant 0 : index
    %c144_61 = arith.constant 144 : index
    %93 = vector.load %arg10[%c0_60, %c144_61] : memref<8x512xf32, #tpu.memory_space<vmem>>, vector<8x256xf32>
    %c0_62 = arith.constant 0 : index
    %c145_63 = arith.constant 145 : index
    %94 = vector.load %arg10[%c0_62, %c145_63] : memref<8x512xf32, #tpu.memory_space<vmem>>, vector<8x256xf32>
    %95 = vector.broadcast %24 : vector<1x256xf32> to vector<8x256xf32>
    %96 = arith.mulf %94, %95 : vector<8x256xf32>
    %97 = tpu.concatenate %78, %79, %82, %85, %86, %89, %92, %93, %96 in 0 : vector<8x256xf32>, vector<8x256xf32>, vector<8x256xf32>, vector<8x256xf32>, vector<8x256xf32>, vector<8x256xf32>, vector<8x256xf32>, vector<8x256xf32>, vector<8x256xf32> -> vector<72x256xf32>
    %cst_64 = arith.constant dense<0.000000e+00> : vector<8x256xf32>
    %98 = tpu.matmul %30, %97, %cst_64 {dimension_numbers = #tpu.dot_dimension_numbers<[1], [0], [0], [1], [0, 0, 1, 1], [], []>} : vector<8x72xf32>, vector<72x256xf32>, vector<8x256xf32> -> vector<8x256xf32>
    %99 = vector.broadcast %32 : vector<8x1xf32> to vector<8x256xf32>
    %100 = arith.addf %98, %99 : vector<8x256xf32>
    %cst_65 = arith.constant 0.000000e+00 : f32
    %101 = vector.broadcast %cst_65 : f32 to vector<8x256xf32>
    %102 = arith.maximumf %100, %101 : vector<8x256xf32>
    %c0_66 = arith.constant 0 : index
    %c0_67 = arith.constant 0 : index
    %c0_68 = arith.constant 0 : index
    %103 = vector.load %arg8[%c0_66, %c0_67, %c0_68] : memref<1x8x256xf32, #tpu.memory_space<vmem>>, vector<1x8x256xf32>
    %104 = vector.shape_cast %103 : vector<1x8x256xf32> to vector<8x256xf32>
    %105 = vector.shape_cast %102 : vector<8x256xf32> to vector<1x8x256xf32>
    tpu.vector_store %arg8[%c0_66, %c0_67, %c0_68], %105 {strides = array<i32>} : memref<1x8x256xf32, #tpu.memory_space<vmem>>, vector<1x8x256xf32>,
    return
  }
  func.func @transform_0(%arg0: i32) -> (i32, i32, i32) {
    %c0_i32 = arith.constant 0 : i32
    %c0_i32_0 = arith.constant 0 : i32
    %c0_i32_1 = arith.constant 0 : i32
    return %arg0, %c0_i32, %c0_i32_0 : i32, i32, i32
  }
  func.func @transform_1(%arg0: i32) -> (i32, i32, i32) {
    %c0_i32 = arith.constant 0 : i32
    %c0_i32_0 = arith.constant 0 : i32
    %c0_i32_1 = arith.constant 0 : i32
    return %arg0, %c0_i32, %c0_i32_0 : i32, i32, i32
  }
  func.func @transform_2(%arg0: i32) -> (i32, i32) {
    %c0_i32 = arith.constant 0 : i32
    %c0_i32_0 = arith.constant 0 : i32
    %c0_i32_1 = arith.constant 0 : i32
    return %c0_i32, %c0_i32_0 : i32, i32
  }
  func.func @transform_3(%arg0: i32) -> (i32, i32) {
    %c0_i32 = arith.constant 0 : i32
    %c0_i32_0 = arith.constant 0 : i32
    %c0_i32_1 = arith.constant 0 : i32
    return %c0_i32, %c0_i32_0 : i32, i32
  }
  func.func @transform_4(%arg0: i32) -> (i32, i32) {
    %c0_i32 = arith.constant 0 : i32
    %c0_i32_0 = arith.constant 0 : i32
    %c0_i32_1 = arith.constant 0 : i32
    return %c0_i32, %c0_i32_0 : i32, i32
  }
  func.func @transform_5(%arg0: i32) -> (i32, i32) {
    %c0_i32 = arith.constant 0 : i32
    %c0_i32_0 = arith.constant 0 : i32
    %c0_i32_1 = arith.constant 0 : i32
    return %c0_i32, %c0_i32_0 : i32, i32
  }
  func.func @transform_6(%arg0: i32) -> (i32, i32) {
    %c0_i32 = arith.constant 0 : i32
    %c0_i32_0 = arith.constant 0 : i32
    %c0_i32_1 = arith.constant 0 : i32
    return %c0_i32, %c0_i32_0 : i32, i32
  }
  func.func @transform_7(%arg0: i32) -> (i32, i32, i32) {
    %c0_i32 = arith.constant 0 : i32
    %c0_i32_0 = arith.constant 0 : i32
    %c0_i32_1 = arith.constant 0 : i32
    return %arg0, %c0_i32, %c0_i32_0 : i32, i32, i32
  }
}

</mosaic_0001>

<bundles_post_ra>
// kernel: up_forward.1
= control target key start
LH: loop header
LB: loop body
LE: loop exit
PB: predicated region body
PF: predicated region fallthrough
CT: control target
= control target key end

     0   :  { %s1551_s24 = smov 0   ;;  %s1841_s0 = inlined_call_operand.vmem [shape: f32[2,4,64], index: 0, kind: input, shape index: {}]   ;;  %s1842_s1 = inlined_call_operand.vmem [shape: f32[2,4,256], index: 1, kind: input, shape index: {}]   ;;  %s1843_s2 = inlined_call_operand.vmem [shape: bf16[64,256], index: 2, kind: input, shape index: {}]   ;;  %s1844_s3 = inlined_call_operand.vmem [shape: bf16[8,72], index: 3, kind: input, shape index: {}]   ;;  %s1845_s4 = inlined_call_operand.vmem [shape: f32[8,1], index: 4, kind: input, shape index: {}]   ;;  %s1846_s5 = inlined_call_operand.vmem [shape: bf16[8,72], index: 5, kind: input, shape index: {}]   ;;  %s1847_s6 = inlined_call_operand.vmem [shape: f32[8,1], index: 6, kind: input, shape index: {}]   ;;  %s1848_s7 = inlined_call_operand.vmem [shape: f32[2,8,256], index: 7, kind: output, shape index: {}]  }
   0x1 LB: > { %s1155_s25 = sadd.s32 4294967295, %s1495_s24   ;;  %p1159_p0 = scmp.ge.s32.totalorder %s1495_s24, 1  ;;  %s1495_s24 = sphi %s1551_s24, %s17_s24  }
   0x2   : > { %p246_p1 = scmp.lt.s32.totalorder %s1495_s24, 3 }
   0x4   : > { %p247_p2 = pnand %p1159_p0, %p246_p1 }
   0x5   : > { %v1476_v0 = vld [vmem:[%s1843_s2 + $0x4] ss:$8 sps:$4 sm:$0xff] (!%p247_p2)   ;;  %p282_p3 = scmp.lt.s32.totalorder (!%p247_p2), %s1155_s25, 1  ;;  %v296_v1 = vlaneseq (!%p247_p2)  ;;  %v1478_v2 = vld [vmem:[%s1843_s2] ss:$8 sps:$4 sm:$0xff] (!%p247_p2)   ;;  %v1497_v3 = vmov (!%p247_p2), 0.0  }
   0x6   : > { %250 = sbr.rel (%p247_p2) target bundleno = 1223 (0x4c7), region = 48  ;;  %438 = vmatprep.mubr.f32.mxu0 (!%p247_p2), %v1497_v3  ;;  %795 = vmatprep.mubr.f32.mxu1 (!%p247_p2), %v1497_v3  ;;  %v1479_v4 = vld [vmem:[%s1843_s2 + $0x14] ss:$8 sps:$4 sm:$0xff] (!%p247_p2)   ;;  %v1481_v5 = vld [vmem:[%s1843_s2 + $0x10] ss:$8 sps:$4 sm:$0xff] (!%p247_p2)   ;;  %s1498_s29 = smov (!%p247_p2), 1  }
   0x7   : > { %1177 = vmatprep.subr.bf16.mxu0 (!%p247_p2), %v1476_v0  ;;  %v297_v6 = vand.u32 (!%p247_p2), 127, %v296_v1  ;;  %v1482_v7 = vld [vmem:[%s1843_s2 + $0x24] ss:$8 sps:$4 sm:$0xff] (!%p247_p2)   ;;  %v1484_v11 = vld [vmem:[%s1843_s2 + $0x20] ss:$8 sps:$4 sm:$0xff] (!%p247_p2)   ;;  %s1499_s30 = smov (!%p247_p2), 113  }
   0x8   : > { %1179 = vmatpush1.bf16.msra.mxu0 (!%p247_p2), %v1478_v2  ;;  %v1485_v14 = vld [vmem:[%s1843_s2 + $0x34] ss:$8 sps:$4 sm:$0xff] (!%p247_p2)   ;;  %v1487_v19 = vld [vmem:[%s1843_s2 + $0x30] ss:$8 sps:$4 sm:$0xff] (!%p247_p2)   ;;  %vm370_vm4 = vcmask (!%p247_p2), 523264   ;;  %s1500_s8 = smov (!%p247_p2), 15  }
   0x9   : > { %1181 = vmatprep.subr.bf16.mxu0 (!%p247_p2), %v1479_v4  ;;  %v298_v8 = vadd.s32 (!%p247_p2), 128, %v297_v6  ;;  %v303_v9 = vand.u32 (!%p247_p2), 15, %v297_v6  ;;  %s1501_s9 = smov (!%p247_p2), 127   ;;  %s1502_s10 = smov (!%p247_p2), 111   ;;  %vm494_vm5 = vcmask (!%p247_p2), 1039360   ;;  %vm509_vm6 = vcmask (!%p247_p2), 7168  }
   0xa   : > { %s1503_s11 = smov (!%p247_p2), 17   ;;  %s1504_s12 = smov (!%p247_p2), 126   ;;  %vm482_vm7 = vcmask (!%p247_p2), 924672   ;;  %vm521_vm8 = vcmask (!%p247_p2), 121856   ;;  %vm468_vm9 = vcmask (!%p247_p2), 908288   ;;  %vm533_vm10 = vcmask (!%p247_p2), 138240  }
   0xb   : > { %v310_v13 = vand.u32 (!%p247_p2), 15, %v298_v8  ;;  %vm329_vm0 = vcmp.le.s32.totalorder (!%p247_p2), %v303_v9, 14  ;;  %vm323_vm1 = vcmp.ge.s32.totalorder (!%p247_p2), %v303_v9, 1  ;;  %s1506_s14 = smov (!%p247_p2), 112   ;;  %s1507_s15 = smov (!%p247_p2), 95   ;;  %vm573_vm11 = vcmask (!%p247_p2), 916480  }
   0xc   : > { %1183 = vmatpush1.bf16.msra.mxu0 (!%p247_p2), %v1481_v5  ;;  %v1167_v15 = vsel (!%p247_p2), %vm329_vm0, 1.0, %v1497_v3  ;;  %v1165_v17 = vsel (!%p247_p2), %vm323_vm1, 1.0, %v1497_v3  ;;  %s1509_s17 = smov (!%p247_p2), 94   ;;  %vm561_vm12 = vcmask (!%p247_p2), 1031168   ;;  %vm590_vm13 = vcmask (!%p247_p2), 900096  }
   0xd   : > { %s1850_s25 = smov (!%p282_p3, %s1155_s25), 1  ;;  %1185 = vmatprep.subr.bf16.mxu0 %v1482_v7  ;;  %vm330_vm2 = vcmp.le.s32.totalorder %v310_v13, 14  ;;  %vm324_vm3 = vcmp.ge.s32.totalorder %v310_v13, 1  ;;  %vm614_vm14 = vcmask 777216   ;;  %vm602_vm15 = vcmask 785408  }
   0xe   : > { %s1174_s13 = sshll.u32 %s1850_s25, 3  ;;  %s1160_s21 = sshll.u32 %s1850_s25, 2  ;;  %v1168_v16 = vsel %vm330_vm2, 1.0, %v1497_v3  ;;  %v1166_v18 = vsel %vm324_vm3, 1.0, %v1497_v3  ;;  %vm626_vm0 = vcmask 769024   ;;  %vm727_vm1 = vcmask 588800  }
   0xf   : > { %s290_s16 = scalar_lea.vmem %s1842_s1, %s1174_s13  ;;  %v1264_v20 = vpack.i.bf16 %v1168_v16, %v1167_v15  ;;  %s285_s28 = scalar_lea.vmem %s1841_s0, %s1160_s21  ;;  %v1269_v21 = vpack.i.bf16 %v1166_v18, %v1165_v17 }
  0x10   : > { %v445_v10 = vld [vmem:[%s290_s16] sm:$0xff]  ;;  %1187 = vmatpush1.bf16.msra.mxu0 %v1484_v11  ;;  %s1505_s13 = smov 110   ;;  %s1508_s16 = smov 96  }
  0x11   : > { %v447_v12 = vcombine.high %v445_v10, %v445_v10  ;;  %449 = vst [vmem:[#allocation2 + $0x8] sm:$0xf] %v445_v10  ;;  %1189 = vmatprep.subr.bf16.mxu0 %v1485_v14  ;;  %1265 = vrot.lane.b32.xlu1 %v1264_v20, %s1498_s29  ;;  %v369_v22 = vld [vmem:[%s285_s28] sm:$0xf]  ;;  %s1175_s28 = sshll.u32 %s1850_s25, 4 }
  0x12   : > { %1255 = vrot.lane.b32.xlu0 %v1264_v20, %s1499_s30 }
  0x13   : > { %450 = vst [vmem:[#allocation2 + $0x10] sm:$0xf] %v447_v12  ;;  %v1510_v12 = vmov 0  }
  0x14   : > { %1191 = vmatpush1.bf16.msra.mxu0 %v1487_v19  ;;  %1379 = vset.pattern.permute.xlu1 %v1510_v12 }
  0x15   : > { %1270 = vrot.lane.b32.xlu1 %v1269_v21, %s1500_s8  ;;  %1475 = vset.pattern.permute.xlu0 %v1510_v12  ;;  %s295_s8 = scalar_lea.vmem %s1848_s7, %s1175_s28 }
  0x16   : > { %1260 = vrot.lane.b32.xlu0 %v1269_v21, %s1501_s9 }
  0x17   : > { %1169 = vmatmul.mubr.msk.f32.vlgmr.msra.gmra.mrb[0].mxu0 %vm370_vm4, %v369_v22 }
  0x18   : > { %1077 = vmatprep.mubr.f32.mxu0 %v1497_v3 }
  0x19   : > { %1280 = vrot.lane.b32.xlu1 %v1269_v21, %s1502_s10 }
  0x1a   : > { %1275 = vrot.lane.b32.xlu0 %v1264_v20, %s1503_s11 }
  0x1d   : > { %544 = vrot.lane.b32.xlu1 %v1497_v3, %s1501_s9 }
  0x83   : > { %v1266_v23 = vpop.permute.xlu1 %1265 }
  0x84   : > { %v1256_v24 = vpop.permute.xlu0 %1255  ;;  %v1268_v25 = vunpack.i.h.bf16 %v1266_v23  ;;  %v1623_v39 = vunpack.i.l.bf16 %v1266_v23 }
  0x85   : > { %v1257_v26 = vunpack.i.l.bf16 %v1256_v24  ;;  %v1625_v40 = vunpack.i.h.bf16 %v1256_v24 }
  0x86   : > { %v1609_v30 = vmul.f32 0.0, %v1268_v25  ;;  %v1634_v48 = vsel %vm509_vm6, %v1623_v39, %v1268_v25 }
  0x87   : > { %v1605_v27 = vmul.f32 0.0, %v1257_v26  ;;  %v1271_v42 = vpop.permute.xlu1 %1270  ;;  %v1637_v49 = vsel %vm482_vm7, %v1257_v26, %v1625_v40 }
  0x88   : > { %v1261_v28 = vpop.permute.xlu0 %1260  ;;  %v1273_v46 = vunpack.i.h.bf16 %v1271_v42  ;;  %v1629_v47 = vunpack.i.l.bf16 %v1271_v42 }
  0x89   : > { %v1262_v29 = vunpack.i.l.bf16 %v1261_v28  ;;  %555 = vrot.lane.b32.xlu0 %v1605_v27, %s1504_s12  ;;  %v1617_v36 = vunpack.i.h.bf16 %v1261_v28 }
  0x8a   : > { %v1644_v55 = vsel %vm521_vm8, %v1629_v47, %v1273_v46  ;;  %v1652_v62 = vmul.f32 0.0, %v1273_v46 }
  0x8b   : > { %v1611_v31 = vmul.f32 0.0, %v1262_v29  ;;  %v1621_v37 = vsel %vm494_vm5, %v1262_v29, %v1617_v36  ;;  %v1281_v61 = vpop.permute.xlu1 %1280 }
  0x8c   : > { %v1276_v60 = vpop.permute.xlu0 %1275  ;;  %v1656_v1 = vunpack.i.h.bf16 %v1281_v61  ;;  %v1282_v2 = vunpack.i.l.bf16 %v1281_v61 }
  0x8d   : > { %588 = vrot.lane.b32.xlu0 %v1609_v30, %s1505_s13  ;;  %567 = vrot.lane.b32.xlu1 %v1611_v31, %s1506_s14  ;;  %v1654_v63 = vunpack.i.l.bf16 %v1276_v60  ;;  %v1278_v4 = vunpack.i.h.bf16 %v1276_v60 }
  0x8e   : > { %v1664_v6 = vsel %vm468_vm9, %v1282_v2, %v1656_v1  ;;  %v1684_v22 = vmul.f32 0.0, %v1282_v2 }
  0x8f   : > { %v1668_v7 = vsel %vm533_vm10, %v1654_v63, %v1278_v4  ;;  %v1673_v8 = vmul.f32 0.0, %v1278_v4  ;;  %v545_v14 = vpop.permute.xlu1 %544 }
  0xea   : > { %v440_v32 = vpop.f32.mrb[0].mxu0 }
  0xeb   : > { %v453_v33 = vrot.slane %v440_v32, 4  ;;  %v442_v34 = vpop.f32.mrb[1].mxu0 }
  0xec   : > { %v454_v35 = vrot.slane %v442_v34, 4 }
  0xed   : > { %457 = vst [vmem:[#allocation2 + $0x8] sm:$0xf0] %v453_v33 }
  0xee   : > { %458 = vst [vmem:[#allocation2 + $0x10] sm:$0xf0] %v454_v35 }
  0xf4   : > { %v502_v38 = vld [vmem:[#allocation2 + $0x8] sm:$0xff] }
  0xf5   : > { %v503_v41 = vld [vmem:[#allocation2 + $0x10] sm:$0xff]  ;;  %v500_v44 = vmul.f32 %v502_v38, %v1621_v37  ;;  %v514_v50 = vmul.f32 %v1623_v39, %v502_v38  ;;  %v488_v53 = vmul.f32 %v502_v38, %v1637_v49  ;;  %v526_v58 = vmul.f32 %v1629_v47, %v502_v38 }
  0xf6   : > { %v1299_v43 = vpack.i.bf16 %v503_v41, %v502_v38  ;;  %v501_v45 = vmul.f32 %v1617_v36, %v503_v41  ;;  %v515_v52 = vmul.f32 %v1634_v48, %v503_v41  ;;  %v489_v54 = vmul.f32 %v1625_v40, %v503_v41 }
  0xf7   : > { %v527_v59 = vmul.f32 %v1644_v55, %v503_v41  ;;  %v538_v5 = vmul.f32 %v1654_v63, %v502_v38  ;;  %v539_v9 = vmul.f32 %v1668_v7, %v503_v41  ;;  %v474_v10 = vmul.f32 %v502_v38, %v1664_v6 }
  0xf8   : > { %1300 = vrot.lane.b32.xlu1 %v1299_v43, %s1507_s15  ;;  %1285 = vrot.lane.b32.xlu0 %v1299_v43, %s1501_s9  ;;  %v1304_v51 = vpack.i.bf16 %v501_v45, %v500_v44  ;;  %v1309_v56 = vpack.i.bf16 %v515_v52, %v514_v50  ;;  %v1294_v57 = vpack.i.bf16 %v489_v54, %v488_v53 }
  0xf9   : > { %v1314_v0 = vpack.i.bf16 %v527_v59, %v526_v58  ;;  %v475_v11 = vmul.f32 %v1656_v1, %v503_v41 }
  0xfb   : > { %v1319_v13 = vpack.i.bf16 %v475_v11, %v474_v10  ;;  %v556_v15 = vpop.permute.xlu0 %555 }
  0xfc   : > { %1290 = vrot.lane.b32.xlu0 %v1299_v43, %s1502_s10  ;;  %1305 = vrot.lane.b32.xlu1 %v1304_v51, %s1506_s14 }
  0xff   : > { %v589_v16 = vpop.permute.xlu0 %588  ;;  %v568_v17 = vpop.permute.xlu1 %567 }
 0x100   : > { %1310 = vrot.lane.b32.xlu1 %v1309_v56, %s1505_s13  ;;  %1295 = vrot.lane.b32.xlu0 %v1294_v57, %s1504_s12 }
 0x104   : > { %1315 = vrot.lane.b32.xlu1 %v1314_v0, %s1508_s16  ;;  %600 = vrot.lane.b32.xlu0 %v1652_v62, %s1508_s16 }
 0x108   : > { %620 = vrot.lane.b32.xlu1 %v538_v5, %s1509_s17  ;;  %612 = vrot.lane.b32.xlu0 %v1497_v3, %s1507_s15 }
 0x10c   : > { %624 = vrot.lane.b32.xlu1 %v1673_v8, %s1509_s17  ;;  %622 = vrot.lane.b32.xlu0 %v539_v9, %s1509_s17 }
 0x110   : > { %1320 = vrot.lane.b32.xlu0 %v1319_v13, %s1503_s11 }
 0x16a   : > { %v1682_v18 = vpop.permute.xlu1 %1300  ;;  %v1286_v19 = vpop.permute.xlu0 %1285 }
 0x16b   : > { %v1288_v20 = vunpack.i.h.bf16 %v1286_v19  ;;  %v1287_v21 = vunpack.i.l.bf16 %v1286_v19  ;;  %v1303_v60 = vunpack.i.h.bf16 %v1682_v18  ;;  %v1302_v61 = vunpack.i.l.bf16 %v1682_v18 }
 0x16d   : > { %v551_v23 = vsel %vm494_vm5, %v1287_v21, %v1288_v20  ;;  %v550_v24 = vsel %vm494_vm5, %v545_v14, %v1287_v21  ;;  %v615_v13 = vsel %vm614_vm14, %v1302_v61, %v1303_v60 }
 0x16e   : > { %v1329_v25 = vpack.i.bf16 %v1288_v20, %v551_v23  ;;  %v1291_v26 = vpop.permute.xlu0 %1290  ;;  %v1306_v28 = vpop.permute.xlu1 %1305  ;;  %v1324_v29 = vpack.i.bf16 %v550_v24, %v1684_v22 }
 0x16f   : > { %v1293_v32 = vunpack.i.h.bf16 %v1291_v26  ;;  %v1292_v33 = vunpack.i.l.bf16 %v1291_v26  ;;  %v1308_v34 = vunpack.i.h.bf16 %v1306_v28  ;;  %v1307_v35 = vunpack.i.l.bf16 %v1306_v28  ;;  %v363_v26 = vld [vmem:[%s1845_s4] sm:$0xff] }
 0x170   : > { %1330 = vrot.lane.b32.xlu1 %v1329_v25, %s1503_s11  ;;  %1325 = vrot.lane.b32.xlu0 %v1324_v29, %s1503_s11 }
 0x171   : > { %v580_v38 = vsel %vm468_vm9, %v1292_v33, %v1293_v32  ;;  %v575_v44 = vsel %vm573_vm11, %v1307_v35, %v1308_v34  ;;  %v574_v51 = vsel %vm573_vm11, %v568_v17, %v1307_v35 }
 0x172   : > { %v1334_v41 = vpack.i.bf16 %v1293_v32, %v580_v38  ;;  %v1311_v42 = vpop.permute.xlu1 %1310  ;;  %v1296_v43 = vpop.permute.xlu0 %1295  ;;  %v1349_v52 = vpack.i.bf16 %v1308_v34, %v575_v44 }
 0x173   : > { %v1298_v45 = vunpack.i.h.bf16 %v1296_v43  ;;  %v1297_v46 = vunpack.i.l.bf16 %v1296_v43  ;;  %v1313_v53 = vunpack.i.h.bf16 %v1311_v42  ;;  %v1312_v54 = vunpack.i.l.bf16 %v1311_v42 }
 0x174   : > { %1335 = vrot.lane.b32.xlu0 %v1334_v41, %s1503_s11 }
 0x175   : > { %v562_v50 = vsel %vm561_vm12, %v556_v15, %v1297_v46  ;;  %v563_v58 = vsel %vm561_vm12, %v1297_v46, %v1298_v45  ;;  %v1354_v0 = vpack.i.bf16 %v1312_v54, %v1292_v33  ;;  %v591_v5 = vsel %vm590_vm13, %v1312_v54, %v1313_v53 }
 0x176   : > { %v601_v56 = vpop.permute.xlu0 %600  ;;  %v1339_v57 = vpack.i.bf16 %v574_v51, %v562_v50  ;;  %v1316_v59 = vpop.permute.xlu1 %1315  ;;  %v1344_v2 = vpack.i.bf16 %v1298_v45, %v563_v58  ;;  %v592_v12 = vsel %vm590_vm13, %v1313_v53, %v589_v16 }
 0x177   : > { %v1318_v9 = vunpack.i.h.bf16 %v1316_v59  ;;  %v1317_v10 = vunpack.i.l.bf16 %v1316_v59  ;;  %v1364_v15 = vpack.i.bf16 %v592_v12, %v591_v5 }
 0x178   : > { %1340 = vrot.lane.b32.xlu1 %v1339_v57, %s1503_s11  ;;  %1350 = vrot.lane.b32.xlu0 %v1349_v52, %s1503_s11 }
 0x179   : > { %v603_v17 = vsel %vm602_vm15, %v1317_v10, %v1318_v9  ;;  %v604_v18 = vsel %vm602_vm15, %v1318_v9, %v601_v56  ;;  %v1374_v23 = vpack.i.bf16 %v1302_v61, %v1317_v10 }
 0x17a   : > { %v613_v4 = vpop.permute.xlu0 %612  ;;  %v1369_v16 = vpack.i.bf16 %v604_v18, %v603_v17  ;;  %v621_v20 = vpop.permute.xlu1 %620 }
 0x17b   : > { %v616_v11 = vsel %vm614_vm14, %v1303_v60, %v613_v4 }
 0x17c   : > { %1345 = vrot.lane.b32.xlu1 %v1344_v2, %s1503_s11  ;;  %1355 = vrot.lane.b32.xlu0 %v1354_v0, %s1503_s11  ;;  %v1359_v14 = vpack.i.bf16 %v616_v11, %v615_v13 }
 0x17e   : > { %v623_v19 = vpop.permute.xlu0 %622  ;;  %v625_v24 = vpop.permute.xlu1 %624 }
 0x17f   : > { %v627_v21 = vsel %vm626_vm0, %v621_v20, %v623_v19  ;;  %v628_v25 = vsel %vm626_vm0, %v623_v19, %v625_v24 }
 0x180   : > { %1365 = vrot.lane.b32.xlu1 %v1364_v15, %s1503_s11  ;;  %1360 = vrot.lane.b32.xlu0 %v1359_v14, %s1503_s11 }
 0x182   : > { %v1321_v28 = vpop.permute.xlu0 %1320 }
 0x183   : > { %v1323_v29 = vunpack.i.h.bf16 %v1321_v28  ;;  %v1322_v32 = vunpack.i.l.bf16 %v1321_v28 }
 0x184   : > { %1370 = vrot.lane.b32.xlu1 %v1369_v16, %s1503_s11  ;;  %687 = vrot.lane.b32.xlu0 %v627_v21, %s1503_s11 }
 0x185   : > { %v692_v42 = vsel %vm533_vm10, %v1322_v32, %v1323_v29 }
 0x188   : > { %1375 = vrot.lane.b32.xlu1 %v1374_v23, %s1503_s11  ;;  %685 = vrot.lane.b32.xlu0 %v621_v20, %s1503_s11 }
 0x18c   : > { %689 = vrot.lane.b32.xlu1 %v628_v25, %s1503_s11  ;;  %844 = vrot.lane.b32.xlu0 %v1605_v27, %s1504_s12 }
 0x190   : > { %631 = vperm.xlu1 %1379, %v363_v26   ;;  %875 = vrot.lane.b32.xlu0 %v1609_v30, %s1505_s13 }
 0x194   : > { %833 = vrot.lane.b32.xlu1 %v1497_v3, %s1501_s9 }
 0x198   : > { %855 = vrot.lane.b32.xlu1 %v1611_v31, %s1506_s14 }
 0x1e2   : > { %v1331_v33 = vpop.permute.xlu1 %1330  ;;  %v1326_v34 = vpop.permute.xlu0 %1325 }
 0x1e3   : > { %v1333_v27 = vunpack.i.h.bf16 %v1331_v33  ;;  %v1332_v35 = vunpack.i.l.bf16 %v1331_v33  ;;  %v1328_v38 = vunpack.i.h.bf16 %v1326_v34  ;;  %v1327_v41 = vunpack.i.l.bf16 %v1326_v34 }
 0x1e5   : > { %v694_v43 = vsel %vm533_vm10, %v1332_v35, %v1333_v27  ;;  %v691_v30 = vsel %vm533_vm10, %v1327_v41, %v1322_v32  ;;  %v693_v44 = vsel %vm533_vm10, %v1328_v38, %v1332_v35 }
 0x1e6   : > { %v1336_v45 = vpop.permute.xlu0 %1335  ;;  %v1192_v46 = vpack.c.bf16 %v694_v43, %v692_v42  ;;  %v1194_v31 = vpack.c.bf16 %v693_v44, %v691_v30 }
 0x1e7   : > { %v1338_v61 = vunpack.i.h.bf16 %v1336_v45  ;;  %v1337_v0 = vunpack.i.l.bf16 %v1336_v45 }
 0x1e8   : > { %1193 = vmatprep.subr.bf16.mxu1 %v1192_v46  ;;  %v359_v46 = vld [vmem:[%s1844_s3] sm:$0xf] }
 0x1e9   : > { %1195 = vmatpush1.bf16.msra.mxu1 %v1194_v31  ;;  %v700_v19 = vsel %vm533_vm10, %v1337_v0, %v1338_v61 }
 0x1ea   : > { %v1341_v50 = vpop.permute.xlu1 %1340  ;;  %v1351_v51 = vpop.permute.xlu0 %1350 }
 0x1eb   : > { %v1343_v52 = vunpack.i.h.bf16 %v1341_v50  ;;  %v1353_v53 = vunpack.i.h.bf16 %v1351_v51  ;;  %v1352_v54 = vunpack.i.l.bf16 %v1351_v51  ;;  %v1342_v58 = vunpack.i.l.bf16 %v1341_v50 }
 0x1ec   : > { %v360_v51 = vunpack.c.l.bf16 %v359_v46 }
 0x1ed   : > { %v698_v5 = vsel %vm533_vm10, %v1352_v54, %v1353_v53  ;;  %v697_v10 = vsel %vm533_vm10, %v1343_v52, %v1352_v54 }
 0x1ee   : > { %v1346_v56 = vpop.permute.xlu1 %1345  ;;  %v1356_v57 = vpop.permute.xlu0 %1355 }
 0x1ef   : > { %v1348_v59 = vunpack.i.h.bf16 %v1346_v56  ;;  %v1347_v60 = vunpack.i.l.bf16 %v1346_v56  ;;  %v1357_v2 = vunpack.i.l.bf16 %v1356_v57  ;;  %v1358_v15 = vunpack.i.h.bf16 %v1356_v57 }
 0x1f1   : > { %v696_v4 = vsel %vm533_vm10, %v1347_v60, %v1348_v59  ;;  %v695_v9 = vsel %vm533_vm10, %v1342_v58, %v1347_v60  ;;  %v699_v16 = vsel %vm533_vm10, %v1357_v2, %v1337_v0 }
 0x1f2   : > { %v1366_v11 = vpop.permute.xlu1 %1365  ;;  %v1361_v12 = vpop.permute.xlu0 %1360  ;;  %v1196_v13 = vpack.c.bf16 %v698_v5, %v696_v4  ;;  %v1198_v14 = vpack.c.bf16 %v697_v10, %v695_v9 }
 0x1f3   : > { %v1368_v17 = vunpack.i.h.bf16 %v1366_v11  ;;  %v1367_v18 = vunpack.i.l.bf16 %v1366_v11  ;;  %v1363_v20 = vunpack.i.h.bf16 %v1361_v12  ;;  %v1362_v21 = vunpack.i.l.bf16 %v1361_v12 }
 0x1f4   : > { %1197 = vmatprep.subr.bf16.mxu1 %v1196_v13 }
 0x1f5   : > { %1199 = vmatpush1.bf16.msra.mxu1 %v1198_v14  ;;  %v702_v23 = vsel %vm533_vm10, %v1367_v18, %v1368_v17  ;;  %v701_v24 = vsel %vm533_vm10, %v1358_v15, %v1367_v18  ;;  %v706_v34 = vsel %vm533_vm10, %v1362_v21, %v1363_v20 }
 0x1f6   : > { %v1371_v25 = vpop.permute.xlu1 %1370  ;;  %v1200_v26 = vpack.c.bf16 %v702_v23, %v700_v19  ;;  %v1202_v28 = vpack.c.bf16 %v701_v24, %v699_v16  ;;  %v688_v27 = vpop.permute.xlu0 %687 }
 0x1f7   : > { %v1373_v29 = vunpack.i.h.bf16 %v1371_v25  ;;  %v1372_v32 = vunpack.i.l.bf16 %v1371_v25 }
 0x1f8   : > { %1201 = vmatprep.subr.bf16.mxu1 %v1200_v26 }
 0x1f9   : > { %1203 = vmatpush1.bf16.msra.mxu1 %v1202_v28  ;;  %v704_v33 = vsel %vm533_vm10, %v1372_v32, %v1373_v29 }
 0x1fa   : > { %v1376_v35 = vpop.permute.xlu1 %1375  ;;  %v1204_v38 = vpack.c.bf16 %v706_v34, %v704_v33  ;;  %v686_v50 = vpop.permute.xlu0 %685 }
 0x1fb   : > { %v1378_v41 = vunpack.i.h.bf16 %v1376_v35  ;;  %v1377_v42 = vunpack.i.l.bf16 %v1376_v35  ;;  %v707_v52 = vsel %vm533_vm10, %v686_v50, %v688_v27 }
 0x1fc   : > { %1205 = vmatprep.subr.bf16.mxu1 %v1204_v38 }
 0x1fd   : > { %v703_v43 = vsel %vm533_vm10, %v1377_v42, %v1372_v32  ;;  %v705_v30 = vsel %vm533_vm10, %v1378_v41, %v1362_v21 }
 0x1fe   : > { %v690_v44 = vpop.permute.xlu1 %689  ;;  %v1206_v45 = vpack.c.bf16 %v705_v30, %v703_v43 }
 0x1ff   : > { %v708_v31 = vsel %vm533_vm10, %v688_v27, %v690_v44 }
 0x200   : > { %1207 = vmatpush1.bf16.msra.mxu1 %v1206_v45 }
 0x201   : > { %747 = vmatprep.subr.mxu1 %v708_v31 }
 0x204   : > { %748 = vmatpush1.msra.mxu1 %v707_v52 }
 0x205   : > { %1170 = vmatmul.mubr.msk.f32.vlgmr.msra.gmra.mrb[0].mxu1 %vm727_vm1, %v360_v51 }
 0x20f   : > { %v632_v53 = vpop.permute.xlu1 %631 }
 0x2d8   : > { %v797_v54 = vpop.f32.mrb[0].mxu1 }
 0x2d9   : > { %v798_v56 = vadd.f32 %v797_v54, %v632_v53  ;;  %v799_v57 = vpop.f32.mrb[1].mxu1 }
 0x2da   : > { %v800_v58 = vadd.f32 %v799_v57, %v632_v53 }
 0x2db   : > { %v802_v59 = vmax.f32 %v798_v56, 0.0 }
 0x2dc   : > { %v803_v60 = vmax.f32 %v800_v58, 0.0 }
 0x2dd   : > { %v816_v61 = vmul.f32 %v802_v59, %v1621_v37  ;;  %v821_v0 = vmul.f32 %v1623_v39, %v802_v59  ;;  %v813_v2 = vmul.f32 %v802_v59, %v1637_v49  ;;  %v824_v4 = vmul.f32 %v1629_v47, %v802_v59 }
 0x2de   : > { %v1395_v5 = vpack.i.bf16 %v803_v60, %v802_v59  ;;  %v817_v9 = vmul.f32 %v1617_v36, %v803_v60  ;;  %v822_v10 = vmul.f32 %v803_v60, %v1634_v48  ;;  %v814_v11 = vmul.f32 %v1625_v40, %v803_v60  ;;  %v845_v48 = vpop.permute.xlu0 %844 }
 0x2df   : > { %v825_v12 = vmul.f32 %v803_v60, %v1644_v55  ;;  %v810_v39 = vmul.f32 %v802_v59, %v1664_v6  ;;  %v811_v47 = vmul.f32 %v1656_v1, %v803_v60  ;;  %v827_v36 = vmul.f32 %v1654_v63, %v802_v59  ;;  %v834_v55 = vpop.permute.xlu1 %833 }
 0x2e0   : > { %1396 = vrot.lane.b32.xlu1 %v1395_v5, %s1507_s15  ;;  %1381 = vrot.lane.b32.xlu0 %v1395_v5, %s1501_s9  ;;  %v1400_v37 = vpack.i.bf16 %v817_v9, %v816_v61  ;;  %v1405_v13 = vpack.i.bf16 %v822_v10, %v821_v0  ;;  %v1390_v49 = vpack.i.bf16 %v814_v11, %v813_v2 }
 0x2e1   : > { %v1410_v14 = vpack.i.bf16 %v825_v12, %v824_v4  ;;  %v1415_v15 = vpack.i.bf16 %v811_v47, %v810_v39  ;;  %v828_v40 = vmul.f32 %v803_v60, %v1668_v7  ;;  %v364_v39 = vld [vmem:[%s1847_s6] sm:$0xff] }
 0x2e2   : > { %v876_v1 = vpop.permute.xlu0 %875 }
 0x2e4   : > { %1386 = vrot.lane.b32.xlu0 %v1395_v5, %s1502_s10  ;;  %1401 = vrot.lane.b32.xlu1 %v1400_v37, %s1506_s14 }
 0x2e8   : > { %1406 = vrot.lane.b32.xlu1 %v1405_v13, %s1505_s13  ;;  %1391 = vrot.lane.b32.xlu0 %v1390_v49, %s1504_s12 }
 0x2ec   : > { %1411 = vrot.lane.b32.xlu1 %v1410_v14, %s1508_s16  ;;  %886 = vrot.lane.b32.xlu0 %v1652_v62, %s1508_s16  ;;  %v856_v62 = vpop.permute.xlu1 %855 }
 0x2f0   : > { %904 = vrot.lane.b32.xlu1 %v827_v36, %s1509_s17  ;;  %897 = vrot.lane.b32.xlu0 %v1497_v3, %s1507_s15 }
 0x2f4   : > { %908 = vrot.lane.b32.xlu1 %v1673_v8, %s1509_s17  ;;  %906 = vrot.lane.b32.xlu0 %v828_v40, %s1509_s17 }
 0x2f8   : > { %1416 = vrot.lane.b32.xlu0 %v1415_v15, %s1503_s11 }
 0x352   : > { %v1397_v6 = vpop.permute.xlu1 %1396  ;;  %v1382_v63 = vpop.permute.xlu0 %1381 }
 0x353   : > { %v1384_v17 = vunpack.i.h.bf16 %v1382_v63  ;;  %v1383_v18 = vunpack.i.l.bf16 %v1382_v63  ;;  %v1399_v46 = vunpack.i.h.bf16 %v1397_v6  ;;  %v1398_v31 = vunpack.i.l.bf16 %v1397_v6 }
 0x355   : > { %v840_v19 = vsel %vm494_vm5, %v1383_v18, %v1384_v17  ;;  %v839_v3 = vsel %vm494_vm5, %v834_v55, %v1383_v18  ;;  %v899_v59 = vsel %vm614_vm14, %v1398_v31, %v1399_v46 }
 0x356   : > { %v1425_v7 = vpack.i.bf16 %v1384_v17, %v840_v19  ;;  %v1387_v16 = vpop.permute.xlu0 %1386  ;;  %v1402_v20 = vpop.permute.xlu1 %1401  ;;  %v1420_v8 = vpack.i.bf16 %v839_v3, %v1684_v22 }
 0x357   : > { %v1389_v21 = vunpack.i.h.bf16 %v1387_v16  ;;  %v1388_v23 = vunpack.i.l.bf16 %v1387_v16  ;;  %v1404_v24 = vunpack.i.h.bf16 %v1402_v20  ;;  %v1403_v25 = vunpack.i.l.bf16 %v1402_v20 }
 0x358   : > { %1426 = vrot.lane.b32.xlu1 %v1425_v7, %s1503_s11  ;;  %1421 = vrot.lane.b32.xlu0 %v1420_v8, %s1503_s11 }
 0x359   : > { %v867_v26 = vsel %vm468_vm9, %v1388_v23, %v1389_v21  ;;  %v862_v33 = vsel %vm573_vm11, %v1403_v25, %v1404_v24  ;;  %v861_v35 = vsel %vm573_vm11, %v856_v62, %v1403_v25 }
 0x35a   : > { %v1430_v28 = vpack.i.bf16 %v1389_v21, %v867_v26  ;;  %v1407_v29 = vpop.permute.xlu1 %1406  ;;  %v1392_v32 = vpop.permute.xlu0 %1391  ;;  %v1445_v38 = vpack.i.bf16 %v1404_v24, %v862_v33 }
 0x35b   : > { %v1394_v34 = vunpack.i.h.bf16 %v1392_v32  ;;  %v1393_v27 = vunpack.i.l.bf16 %v1392_v32  ;;  %v1409_v41 = vunpack.i.h.bf16 %v1407_v29  ;;  %v1408_v42 = vunpack.i.l.bf16 %v1407_v29 }
 0x35c   : > { %1431 = vrot.lane.b32.xlu0 %v1430_v28, %s1503_s11 }
 0x35d   : > { %v850_v22 = vsel %vm561_vm12, %v845_v48, %v1393_v27  ;;  %v851_v44 = vsel %vm561_vm12, %v1393_v27, %v1394_v34  ;;  %v1450_v50 = vpack.i.bf16 %v1408_v42, %v1388_v23  ;;  %v877_v53 = vsel %vm590_vm13, %v1408_v42, %v1409_v41 }
 0x35e   : > { %v887_v43 = vpop.permute.xlu0 %886  ;;  %v1435_v30 = vpack.i.bf16 %v861_v35, %v850_v22  ;;  %v1412_v45 = vpop.permute.xlu1 %1411  ;;  %v1440_v51 = vpack.i.bf16 %v1394_v34, %v851_v44  ;;  %v878_v58 = vsel %vm590_vm13, %v1409_v41, %v876_v1 }
 0x35f   : > { %v1414_v54 = vunpack.i.h.bf16 %v1412_v45  ;;  %v1413_v56 = vunpack.i.l.bf16 %v1412_v45  ;;  %v1460_v61 = vpack.i.bf16 %v878_v58, %v877_v53 }
 0x360   : > { %1436 = vrot.lane.b32.xlu1 %v1435_v30, %s1503_s11  ;;  %1446 = vrot.lane.b32.xlu0 %v1445_v38, %s1503_s11 }
 0x361   : > { %v888_v0 = vsel %vm602_vm15, %v1413_v56, %v1414_v54  ;;  %v889_v2 = vsel %vm602_vm15, %v1414_v54, %v887_v43  ;;  %v1470_v11 = vpack.i.bf16 %v1398_v31, %v1413_v56 }
 0x362   : > { %v898_v52 = vpop.permute.xlu0 %897  ;;  %v1465_v5 = vpack.i.bf16 %v889_v2, %v888_v0  ;;  %v905_v9 = vpop.permute.xlu1 %904 }
 0x363   : > { %v900_v57 = vsel %vm614_vm14, %v1399_v46, %v898_v52 }
 0x364   : > { %1441 = vrot.lane.b32.xlu1 %v1440_v51, %s1503_s11  ;;  %1451 = vrot.lane.b32.xlu0 %v1450_v50, %s1503_s11  ;;  %v1455_v60 = vpack.i.bf16 %v900_v57, %v899_v59 }
 0x366   : > { %v907_v4 = vpop.permute.xlu0 %906  ;;  %v909_v12 = vpop.permute.xlu1 %908 }
 0x367   : > { %v910_v10 = vsel %vm626_vm0, %v905_v9, %v907_v4  ;;  %v911_v37 = vsel %vm626_vm0, %v907_v4, %v909_v12 }
 0x368   : > { %1461 = vrot.lane.b32.xlu1 %v1460_v61, %s1503_s11  ;;  %1456 = vrot.lane.b32.xlu0 %v1455_v60, %s1503_s11 }
 0x36a   : > { %v1417_v13 = vpop.permute.xlu0 %1416 }
 0x36b   : > { %v1419_v49 = vunpack.i.h.bf16 %v1417_v13  ;;  %v1418_v14 = vunpack.i.l.bf16 %v1417_v13 }
 0x36c   : > { %1466 = vrot.lane.b32.xlu1 %v1465_v5, %s1503_s11  ;;  %970 = vrot.lane.b32.xlu0 %v910_v10, %s1503_s11 }
 0x36d   : > { %v975_v6 = vsel %vm533_vm10, %v1418_v14, %v1419_v49 }
 0x370   : > { %1471 = vrot.lane.b32.xlu1 %v1470_v11, %s1503_s11  ;;  %968 = vrot.lane.b32.xlu0 %v905_v9, %s1503_s11 }
 0x374   : > { %972 = vrot.lane.b32.xlu1 %v911_v37, %s1503_s11  ;;  %v361_v37 = vld [vmem:[%s1846_s5] sm:$0xf] }
 0x375   : > { %v362_v49 = vunpack.c.l.bf16 %v361_v37 }
 0x378   : > { %914 = vperm.xlu1 %1379, %v364_v39  }
 0x3ca   : > { %v1427_v47 = vpop.permute.xlu1 %1426  ;;  %v1422_v15 = vpop.permute.xlu0 %1421 }
 0x3cb   : > { %v1429_v36 = vunpack.i.h.bf16 %v1427_v47  ;;  %v1428_v40 = vunpack.i.l.bf16 %v1427_v47  ;;  %v1424_v48 = vunpack.i.h.bf16 %v1422_v15  ;;  %v1423_v55 = vunpack.i.l.bf16 %v1422_v15 }
 0x3cd   : > { %v976_v1 = vsel %vm533_vm10, %v1424_v48, %v1428_v40  ;;  %v974_v62 = vsel %vm533_vm10, %v1423_v55, %v1418_v14  ;;  %v977_v63 = vsel %vm533_vm10, %v1428_v40, %v1429_v36 }
 0x3ce   : > { %v1210_v17 = vpack.c.bf16 %v976_v1, %v974_v62  ;;  %v1432_v18 = vpop.permute.xlu0 %1431  ;;  %v1208_v19 = vpack.c.bf16 %v977_v63, %v975_v6 }
 0x3cf   : > { %v1434_v28 = vunpack.i.h.bf16 %v1432_v18  ;;  %v1433_v29 = vunpack.i.l.bf16 %v1432_v18 }
 0x3d0   : > { %1209 = vmatprep.subr.bf16.mxu0 %v1208_v19 }
 0x3d1   : > { %1211 = vmatpush1.bf16.msra.mxu0 %v1210_v17  ;;  %v983_v46 = vsel %vm533_vm10, %v1433_v29, %v1434_v28 }
 0x3d2   : > { %v1437_v3 = vpop.permute.xlu1 %1436  ;;  %v1447_v7 = vpop.permute.xlu0 %1446 }
 0x3d3   : > { %v1439_v16 = vunpack.i.h.bf16 %v1437_v3  ;;  %v1449_v20 = vunpack.i.h.bf16 %v1447_v7  ;;  %v1448_v8 = vunpack.i.l.bf16 %v1447_v7  ;;  %v1438_v24 = vunpack.i.l.bf16 %v1437_v3 }
 0x3d5   : > { %v980_v33 = vsel %vm533_vm10, %v1439_v16, %v1448_v8  ;;  %v981_v22 = vsel %vm533_vm10, %v1448_v8, %v1449_v20 }
 0x3d6   : > { %v1442_v21 = vpop.permute.xlu1 %1441  ;;  %v1452_v23 = vpop.permute.xlu0 %1451 }
 0x3d7   : > { %v1444_v25 = vunpack.i.h.bf16 %v1442_v21  ;;  %v1443_v26 = vunpack.i.l.bf16 %v1442_v21  ;;  %v1453_v32 = vunpack.i.l.bf16 %v1452_v23  ;;  %v1454_v43 = vunpack.i.h.bf16 %v1452_v23 }
 0x3d9   : > { %v978_v34 = vsel %vm533_vm10, %v1438_v24, %v1443_v26  ;;  %v979_v27 = vsel %vm533_vm10, %v1443_v26, %v1444_v25  ;;  %v982_v45 = vsel %vm533_vm10, %v1453_v32, %v1433_v29 }
 0x3da   : > { %v1214_v35 = vpack.c.bf16 %v980_v33, %v978_v34  ;;  %v1462_v38 = vpop.permute.xlu1 %1461  ;;  %v1457_v41 = vpop.permute.xlu0 %1456  ;;  %v1212_v42 = vpack.c.bf16 %v981_v22, %v979_v27 }
 0x3db   : > { %v1464_v30 = vunpack.i.h.bf16 %v1462_v38  ;;  %v1463_v44 = vunpack.i.l.bf16 %v1462_v38  ;;  %v1459_v50 = vunpack.i.h.bf16 %v1457_v41  ;;  %v1458_v51 = vunpack.i.l.bf16 %v1457_v41 }
 0x3dc   : > { %1213 = vmatprep.subr.bf16.mxu0 %v1212_v42 }
 0x3dd   : > { %v984_v31 = vsel %vm533_vm10, %v1454_v43, %v1463_v44  ;;  %1215 = vmatpush1.bf16.msra.mxu0 %v1214_v35  ;;  %v985_v52 = vsel %vm533_vm10, %v1463_v44, %v1464_v30  ;;  %v989_v60 = vsel %vm533_vm10, %v1458_v51, %v1459_v50 }
 0x3de   : > { %v1218_v53 = vpack.c.bf16 %v984_v31, %v982_v45  ;;  %v1467_v54 = vpop.permute.xlu1 %1466  ;;  %v1216_v56 = vpack.c.bf16 %v985_v52, %v983_v46  ;;  %v971_v61 = vpop.permute.xlu0 %970 }
 0x3df   : > { %v1469_v57 = vunpack.i.h.bf16 %v1467_v54  ;;  %v1468_v58 = vunpack.i.l.bf16 %v1467_v54 }
 0x3e0   : > { %1217 = vmatprep.subr.bf16.mxu0 %v1216_v56 }
 0x3e1   : > { %1219 = vmatpush1.bf16.msra.mxu0 %v1218_v53  ;;  %v987_v59 = vsel %vm533_vm10, %v1468_v58, %v1469_v57 }
 0x3e2   : > { %v1472_v0 = vpop.permute.xlu1 %1471  ;;  %v1220_v2 = vpack.c.bf16 %v989_v60, %v987_v59  ;;  %v969_v13 = vpop.permute.xlu0 %968 }
 0x3e3   : > { %v1474_v4 = vunpack.i.h.bf16 %v1472_v0  ;;  %v1473_v5 = vunpack.i.l.bf16 %v1472_v0  ;;  %v990_v14 = vsel %vm533_vm10, %v969_v13, %v971_v61 }
 0x3e4   : > { %1221 = vmatprep.subr.bf16.mxu0 %v1220_v2 }
 0x3e5   : > { %v986_v9 = vsel %vm533_vm10, %v1473_v5, %v1468_v58  ;;  %v988_v10 = vsel %vm533_vm10, %v1474_v4, %v1458_v51 }
 0x3e6   : > { %v1222_v11 = vpack.c.bf16 %v988_v10, %v986_v9  ;;  %v973_v12 = vpop.permute.xlu1 %972 }
 0x3e7   : > { %v991_v39 = vsel %vm533_vm10, %v971_v61, %v973_v12 }
 0x3e8   : > { %1223 = vmatpush1.bf16.msra.mxu0 %v1222_v11 }
 0x3e9   : > { %1029 = vmatprep.subr.mxu0 %v991_v39 }
 0x3ec   : > { %1030 = vmatpush1.msra.mxu0 %v990_v14 }
 0x3ed   : > { %1171 = vmatmul.mubr.msk.f32.vlgmr.msra.gmra.mrb[2].mxu0 %vm727_vm1, %v362_v49 }
 0x3f7   : > { %v915_v47 = vpop.permute.xlu1 %914 }
 0x4c0   : > { %v1079_v15 = vpop.f32.mrb[2].mxu0 }
 0x4c1   : > { %v1080_v36 = vadd.f32 %v1079_v15, %v915_v47  ;;  %v1081_v40 = vpop.f32.mrb[3].mxu0 }
 0x4c2   : > { %v1082_v48 = vadd.f32 %v1081_v40, %v915_v47 }
 0x4c3   : > { %v1084_v55 = vmax.f32 %v1080_v36, 0.0 }
 0x4c4   : > { %v1085_v1 = vmax.f32 %v1082_v48, 0.0 }
 0x4c5   : > { %1086 = vst [vmem:[%s295_s8] sm:$0xff] %v1084_v55 }
 0x4c6   : > { %1087 = vst [vmem:[%s295_s8 + $0x8] sm:$0xff] %v1085_v1 }
 0x4c7 PF: > { %s17_s24 = sadd.s32 1, %s1495_s24  }
 0x4c8   : > { %p14_p4 = scmp.ge.s32.totalorder %s17_s24, 4  }
 0x4ca   :  { %16 = sbr.rel (!%p14_p4) target bundleno = 1 (0x1), region = 81 }

</bundles_post_ra>
